<compile_context>
chip_gen: v7x
topology: tpu7x:2x2x1
jax: 0.10.0
libtpu: 0.0.40
codegen_flags: <defaults>
</compile_context>

<pallas_src>
import jax
import jax.numpy as jnp
from jax.experimental import pallas as pl
from jax.experimental.pallas import tpu as pltpu

LANE = 128


def _cdiv(a, b):
    return (a + b - 1) // b


def _round_up(x, m):
    return _cdiv(x, m) * m


def _actor_rnn_kernel(x_ref, wf_ref, bf_ref, o_ref):
    # Single fused GEMM: out = x @ (W1 @ W2) + (b1 @ W2 + b2)
    x = x_ref[...].astype(jnp.bfloat16)           # bf16 MXU inputs
    acc = jnp.dot(x, wf_ref[...], preferred_element_type=jnp.float32)
    acc = acc + bf_ref[...]                       # f32 bias on f32 accumulator
    # Store only the real output columns (narrow masked store; avoids writing
    # the 128-lane padded slab back to HBM).
    n_out = o_ref.shape[-1]
    o_ref[...] = acc[:, :n_out].astype(o_ref.dtype)


def _choose_tiles(B, tb):
    """Pick (TB, Bp, steps): TB multiple of 8, >=2 grid steps when possible."""
    b8 = _round_up(B, 8)
    min_steps = 2 if b8 >= 16 else 1              # keep both v7x TCs busy
    steps = max(min_steps, _cdiv(b8, tb))
    tb_eff = _round_up(_cdiv(b8, steps), 8)
    bp = _round_up(b8, tb_eff)
    return tb_eff, bp, bp // tb_eff


def actor_rnn_forward(x, params, *, tb=512):
    """x: [B, size_input] float32 -> [B, size_output] float32."""
    B, F = x.shape
    wf, bf = params["wf"], params["bf"]
    O_pad = wf.shape[1]
    size_output = params["size_output"]

    TB, Bp, steps = _choose_tiles(B, tb)
    if Bp != B:
        x = jnp.pad(x, ((0, Bp - B), (0, 0)))

    flops = 2 * Bp * F * O_pad
    bytes_accessed = (4 * Bp * F              # x (f32, streamed)
                      + 2 * F * O_pad         # Wf (bf16, resident)
                      + 4 * O_pad             # bf (f32, resident)
                      + 4 * Bp * size_output)  # narrow output

    out = pl.pallas_call(
        _actor_rnn_kernel,
        out_shape=jax.ShapeDtypeStruct((Bp, size_output), jnp.float32),
        grid=(steps,),
        in_specs=[
            pl.BlockSpec((TB, F), lambda i: (i, 0)),        # x: streamed per tile
            pl.BlockSpec((F, O_pad), lambda i: (0, 0)),     # Wf: VMEM-resident
            pl.BlockSpec((1, O_pad), lambda i: (0, 0)),     # bf: VMEM-resident
        ],
        out_specs=pl.BlockSpec((TB, size_output), lambda i: (i, 0)),
        compiler_params=pltpu.CompilerParams(
            dimension_semantics=("parallel",)),
        cost_estimate=pl.CostEstimate(
            flops=flops, transcendentals=0, bytes_accessed=bytes_accessed),
    )(x, wf, bf)

    return out[:B]


def init_params(key, size_input, size_hidden, size_output=1):
    """nn.Linear-style U(-1/sqrt(fan_in)) init for both layers, then the two
    layers are folded offline (in f32) into a single fused weight/bias."""
    def linear(k, fan_in, fan_out):
        kw, kb = jax.random.split(k)
        bound = 1.0 / jnp.sqrt(jnp.float32(fan_in))
        w = jax.random.uniform(kw, (fan_in, fan_out), jnp.float32, -bound, bound)
        b = jax.random.uniform(kb, (fan_out,), jnp.float32, -bound, bound)
        return w, b

    k1, k2 = jax.random.split(key)
    w1, b1 = linear(k1, size_input, size_hidden)    # [F, H], [H]
    w2, b2 = linear(k2, size_hidden, size_output)   # [H, O], [O]

    # Offline fold in f32 (exact linear-algebra identity, rounding only):
    #   (x @ W1 + b1) @ W2 + b2 == x @ (W1 @ W2) + (b1 @ W2 + b2)
    wf = w1 @ w2                                    # [F, O] f32
    bf = b1 @ w2 + b2                               # [O]    f32

    o_pad = _round_up(size_output, LANE)
    wf = jnp.pad(wf, ((0, 0), (0, o_pad - size_output))).astype(jnp.bfloat16)
    bf = jnp.pad(bf[None, :], ((0, 0), (0, o_pad - size_output)))  # f32 [1, O_pad]

    return dict(wf=wf, bf=bf,
                w1=w1, b1=b1, w2=w2, b2=b2,          # unfused f32 copies (reference)
                size_hidden=size_hidden, size_output=size_output)


def _reference(x, p):
    """Plain-JAX f32 two-layer reference (matches the PyTorch module)."""
    h = x @ p["w1"] + p["b1"]
    return h @ p["w2"] + p["b2"]


if __name__ == "__main__":
    size_input, size_hidden, size_output, batch = 16, 32, 1, 8

    key = jax.random.PRNGKey(0)
    kx, kp = jax.random.split(key)
    x = jax.random.normal(kx, (batch, size_input), jnp.float32)
    params = init_params(kp, size_input, size_hidden, size_output)

    out = jax.block_until_ready(actor_rnn_forward(x, params))

    ref = _reference(x, params)
    assert out.shape == (batch, size_output)
    # bf16 inputs on the MXU + offline layer fusion -> small rounding delta
    # vs. the f32 two-matmul reference.
    assert jnp.allclose(out, ref, atol=2e-2, rtol=2e-2), (
        f"max abs err {jnp.max(jnp.abs(out - ref))}")

    print("KERNEL_OK")
</pallas_src>

<mosaic_0001>
module attributes {stable_mosaic.version = 11 : i64} {
  func.func @_actor_rnn_kernel(%arg0: i32, %arg1: memref<8x16xf32, #tpu.memory_space<vmem>>, %arg2: memref<16x128xbf16, #tpu.memory_space<vmem>>, %arg3: memref<1x128xf32, #tpu.memory_space<vmem>>, %arg4: memref<8x1xf32, #tpu.memory_space<vmem>>) attributes {dimension_semantics = [#tpu.dimension_semantics<parallel>], iteration_bounds = array<i64: 1>, scalar_prefetch = 0 : i64, scratch_operands = 0 : i64, tpu.core_type = #tpu.core_type<tc>, window_params = [{transform_indices = @transform_0, window_bounds = array<i64: 8, 16>}, {pipeline_mode = #tpu.pipeline_mode<synchronous>, transform_indices = @transform_1, window_bounds = array<i64: 16, 128>}, {pipeline_mode = #tpu.pipeline_mode<synchronous>, transform_indices = @transform_2, window_bounds = array<i64: 1, 128>}, {transform_indices = @transform_3, window_bounds = array<i64: 8, 1>}]} {
    %c0 = arith.constant 0 : index
    %c0_0 = arith.constant 0 : index
    %0 = vector.load %arg1[%c0, %c0_0] : memref<8x16xf32, #tpu.memory_space<vmem>>, vector<8x16xf32>
    %1 = arith.truncf %0 : vector<8x16xf32> to vector<8x16xbf16>
    %c0_1 = arith.constant 0 : index
    %c0_2 = arith.constant 0 : index
    %2 = vector.load %arg2[%c0_1, %c0_2] : memref<16x128xbf16, #tpu.memory_space<vmem>>, vector<16x128xbf16>
    %cst = arith.constant dense<0.000000e+00> : vector<8x128xf32>
    %3 = tpu.matmul %1, %2, %cst {dimension_numbers = #tpu.dot_dimension_numbers<[1], [0], [0], [1], [0, 0, 1, 1], [], []>} : vector<8x16xbf16>, vector<16x128xbf16>, vector<8x128xf32> -> vector<8x128xf32>
    %c0_3 = arith.constant 0 : index
    %c0_4 = arith.constant 0 : index
    %4 = vector.load %arg3[%c0_3, %c0_4] : memref<1x128xf32, #tpu.memory_space<vmem>>, vector<1x128xf32>
    %5 = vector.broadcast %4 : vector<1x128xf32> to vector<8x128xf32>
    %6 = arith.addf %3, %5 : vector<8x128xf32>
    %7 = vector.extract_strided_slice %6 {offsets = [0, 0], sizes = [8, 1], strides = [1, 1]} : vector<8x128xf32> to vector<8x1xf32>
    %c0_5 = arith.constant 0 : index
    %c0_6 = arith.constant 0 : index
    %8 = vector.load %arg4[%c0_5, %c0_6] : memref<8x1xf32, #tpu.memory_space<vmem>>, vector<8x1xf32>
    tpu.vector_store %arg4[%c0_5, %c0_6], %7 {strides = array<i32>} : memref<8x1xf32, #tpu.memory_space<vmem>>, vector<8x1xf32>,
    return
  }
  func.func @transform_0(%arg0: i32) -> (i32, i32) {
    %c0_i32 = arith.constant 0 : i32
    %c0_i32_0 = arith.constant 0 : i32
    return %arg0, %c0_i32 : i32, i32
  }
  func.func @transform_1(%arg0: i32) -> (i32, i32) {
    %c0_i32 = arith.constant 0 : i32
    %c0_i32_0 = arith.constant 0 : i32
    %c0_i32_1 = arith.constant 0 : i32
    return %c0_i32, %c0_i32_0 : i32, i32
  }
  func.func @transform_2(%arg0: i32) -> (i32, i32) {
    %c0_i32 = arith.constant 0 : i32
    %c0_i32_0 = arith.constant 0 : i32
    %c0_i32_1 = arith.constant 0 : i32
    return %c0_i32, %c0_i32_0 : i32, i32
  }
  func.func @transform_3(%arg0: i32) -> (i32, i32) {
    %c0_i32 = arith.constant 0 : i32
    %c0_i32_0 = arith.constant 0 : i32
    return %arg0, %c0_i32 : i32, i32
  }
}

</mosaic_0001>

<bundles_post_ra>
// kernel: tpu_custom_call.1
= control target key start
LH: loop header
LB: loop body
LE: loop exit
PB: predicated region body
PF: predicated region fallthrough
CT: control target
= control target key end

     0   :  { %8 = vsyncpa [#allocation3], 0  ;;  %s239_s0 = inlined_call_operand.hbm [shape: f32[8,16], index: 0, kind: input, shape index: {}]   ;;  %s240_s1 = inlined_call_operand.hbm [shape: bf16[16,128], index: 1, kind: input, shape index: {}]   ;;  %s241_s2 = inlined_call_operand.vmem [shape: f32[1,128], index: 2, kind: input, shape index: {}]   ;;  %s242_s3 = inlined_call_operand.vmem [shape: f32[8,1], index: 3, kind: output, shape index: {}]  }
   0x1   :  { %9 = vsyncpa [#allocation5], 0  ;;  %s176_s12 = smov [#allocation2]   ;;  %s177_s14 = smov [#allocation4]  }
   0x2   :  { %s16_s13 = sshll.u32 %s176_s12, 4  ;;  %s25_s15 = sshll.u32 %s177_s14, 4  ;;  %s17_s13 = int_to_ptr.vmem [resolvable:$true] %s16_s13  ;;  %s202_s15 = int_to_ptr.vmem [resolvable:$true] %s25_s15 }
   0x3   :  { %s128_s18 = scalar_lea.hbm %s239_s0, 128 }
   0x4   :  { %p129_p0 = scmp.ne.s32.totalorder %s239_s0, %s128_s18  ;;  %p132_p1 = scmp.lt.u32.totalorder %s128_s18, %s239_s0 }
   0x6   :  { %p134_p2 = pnand %p132_p1, %p129_p0 }
   0x8   :  { %137 = shalt.err (!%p134_p2)
}
   0x9   :  { %s138_s23 = scalar_lea.vmem %s17_s13, 128  ;;  %p143_p4 = scmp.lt.s32.totalorder %s17_s13, %s17_s13 }
   0xa   :  { %p139_p3 = scmp.ne.s32.totalorder %s17_s13, %s138_s23  ;;  %p144_p5 = scmp.lt.s32.totalorder %s138_s23, %s138_s23 }
   0xc   :  { %p145_p6 = por %p144_p5, %p143_p4 }
   0xe   :  { %p146_p7 = pnand %p145_p6, %p139_p3 }
  0x10   :  { %149 = shalt.err (!%p146_p7)
}
  0x11   :  { %19 = dma.hbm_to_vmem [thread:$0]  %s239_s0, 128, %s17_s13, [#allocation3]  }
  0x12   :  { %s150_s28 = scalar_lea.hbm %s240_s1, 128 }
  0x13   :  { %p151_p8 = scmp.ne.s32.totalorder %s240_s1, %s150_s28  ;;  %p154_p9 = scmp.lt.u32.totalorder %s150_s28, %s240_s1 }
  0x15   :  { %p156_p10 = pnand %p154_p9, %p151_p8 }
  0x17   :  { %159 = shalt.err (!%p156_p10)
}
  0x18   :  { %s160_s6 = scalar_lea.vmem %s202_s15, 128  ;;  %p165_p12 = scmp.lt.s32.totalorder %s202_s15, %s202_s15 }
  0x19   :  { %p161_p11 = scmp.ne.s32.totalorder %s202_s15, %s160_s6  ;;  %p166_p13 = scmp.lt.s32.totalorder %s160_s6, %s160_s6 }
  0x1b   :  { %p167_p0 = por %p166_p13, %p165_p12 }
  0x1d   :  { %p168_p1 = pnand %p167_p0, %p161_p11 }
  0x1f   :  { %171 = shalt.err (!%p168_p1)
}
  0x20   :  { %s178_s0 = smov 64   ;;  %s179_s7 = smov 4  }
  0x21   :  { %31 = dma.hbm_to_vmem [thread:$0]  %s240_s1, 128, %s202_s15, [#allocation5], %s178_s0, %s178_s0, %s179_s7  }
  0x22   :  { %172 = dma.done.wait [#allocation3], 128  }
  0x23   :  { %173 = vsyncadd [#allocation3], 4294967168 }
  0x24   :  { %174 = dma.done.wait [#allocation5], 128  }
  0x25   :  { %175 = vsyncadd [#allocation5], 4294967168  ;;  %v180_v0 = vmov 0.0   ;;  %vm181_vm0 = vmmov 0   ;;  %v127_v1 = vld [vmem:[#allocation4] sm:$0xff]   ;;  %v41_v2 = vld [vmem:[#allocation2] sm:$0xff] }
  0x26   :  { %115 = vmatprep.subr.bf16.mxu0 %v180_v0  ;;  %117 = vmatprep.mubr.msk.bf16.mxu0 %vm181_vm0, %v180_v0  ;;  %v42_v3 = vpack.c.bf16 %v41_v2, %v41_v2  ;;  %vm58_vm1 = vcmask 130048   ;;  %v110_v4 = vld [vmem:[%s241_s2] ss:$0 sm:$0xff]  ;;  %vm102_vm2 = vcmask 7168  }
  0x27   :  { %116 = vmatpush3.bf16.msra.mxu0 %v127_v1 }
  0x2a   :  { %118 = vmatmul.mubr.msk.bf16.vlgmr.msra.gmra.mrb[0].mxu0 %vm58_vm1, %v42_v3 }
  0xfd   :  { %v96_v5 = vpop.f32.mrb[0].mxu0 }
  0xfe   :  { %v97_v6 = vadd.f32 %v110_v4, %v96_v5  ;;  %v119_v7 = vpop.f32.mrb[1].mxu0 }
  0xff   :  { %v99_v8 = vpop.f32.mrb[2].mxu0 }
 0x100   :  { %103 = vst.msk [vmem:[%s242_s3] sm:$0xff] %vm102_vm2, %v97_v6  ;;  %v120_v9 = vpop.f32.mrb[3].mxu0 }
 0x101   :  { %108 = vsyncpa [#allocation3], 1 }
 0x102   :  { %109 = vsyncpa [#allocation5], 1 }

</bundles_post_ra>
